<compile_context>
chip_gen: v7x
topology: tpu7x:2x2x1
jax: 0.10.0
libtpu: 0.0.40
codegen_flags: <defaults>
</compile_context>

<pallas_src>
import functools

import jax
import jax.numpy as jnp
from jax.experimental import pallas as pl
from jax.experimental.pallas import tpu as pltpu

LN_EPS = 1e-5


def _gated_combiner_kernel(
    struct_ref, gnn_ref,        # streamed row tiles: [TM, S], [TM, G]
    wcs_ref, bcs_ref,           # fused struct slab:  [S, 2O] = [Ws | Wz_s], [1, 2O] = [bs | bz]
    wcg_ref, bcg_ref,           # fused gnn slab:     [G, 2O] = [Wg | Wz_g], [1, 2O] = [bg | 0]
    gamma_ref, beta_ref,        # layer norm:         [1, O], [1, O]
    out_ref,                    # [TM, O]
    *, out_dim, add_struct, add_gnn,
):
    s = struct_ref[...].astype(jnp.float32)
    g = gnn_ref[...].astype(jnp.float32)

    # Two fused MXU matmuls: each produces [transform | gate_logit_half].
    cat_s = jnp.dot(s, wcs_ref[...], preferred_element_type=jnp.float32) + bcs_ref[...]
    cat_g = jnp.dot(g, wcg_ref[...], preferred_element_type=jnp.float32) + bcg_ref[...]

    struct_t = cat_s[:, :out_dim]
    gnn_t = cat_g[:, :out_dim]
    # gate = sigmoid(cat([s, g]) @ Wz^T + bz) == sigmoid(s @ Wz_s + g @ Wz_g + bz)
    z = jax.nn.sigmoid(cat_s[:, out_dim:] + cat_g[:, out_dim:])

    # z*st + (1-z)*gt  ==  gt + z*(st - gt)   (one fewer vreg-wide multiply)
    combined = gnn_t + z * (struct_t - gnn_t)

    # Residual connections: shape-dependent => static at trace time.
    if add_struct:
        combined = combined + s
    if add_gnn:
        combined = combined + g

    # LayerNorm over the feature axis, register-resident; single store.
    mean = jnp.mean(combined, axis=-1, keepdims=True)
    centered = combined - mean
    var = jnp.mean(centered * centered, axis=-1, keepdims=True)
    normed = centered * jax.lax.rsqrt(var + LN_EPS)
    out_ref[...] = (normed * gamma_ref[...] + beta_ref[...]).astype(out_ref.dtype)


def prepare_params(params):
    """One-time weight prep (do NOT redo per call): transpose to [in, out],
    split the gate weight at S, and fuse [transform | gate] into one slab per
    input so the kernel runs 2 matmuls instead of 4."""
    O, S = params["ws"].shape
    _, G = params["wg"].shape
    ws_t = params["ws"].T                     # [S, O]
    wg_t = params["wg"].T                     # [G, O]
    wz_t = params["wz"].T                     # [S+G, O]
    wcat_s = jnp.concatenate([ws_t, wz_t[:S, :]], axis=1)              # [S, 2O]
    wcat_g = jnp.concatenate([wg_t, wz_t[S:, :]], axis=1)              # [G, 2O]
    bcat_s = jnp.concatenate([params["bs"], params["bz"]]).reshape(1, 2 * O)
    bcat_g = jnp.concatenate(
        [params["bg"], jnp.zeros_like(params["bz"])]).reshape(1, 2 * O)
    return {
        "wcat_s": wcat_s, "bcat_s": bcat_s,
        "wcat_g": wcat_g, "bcat_g": bcat_g,
        "gamma": params["gamma"].reshape(1, O),
        "beta": params["beta"].reshape(1, O),
    }


def _choose_row_tile(N, S, G, O, itemsize):
    """Largest row tile (multiple of 8) whose double-buffered streamed tiles fit
    a conservative VMEM budget that is safe on v7x (64 MiB) as well as
    v5e/v6e (128 MiB)."""
    budget = 16 << 20  # bytes for streamed (double-buffered) tiles
    per_row = (2 * (S + G) + 2 * O) * max(itemsize, 4)  # in + out, x2 buffers
    tm = budget // max(per_row, 1)
    tm = max(8, min(2048, (tm // 8) * 8))
    n_rounded = ((N + 7) // 8) * 8
    return min(tm, max(8, n_rounded))


def gated_combiner(struct_emb, gnn_emb, prepared):
    """struct_emb: [..., S], gnn_emb: [..., G]; prepared = prepare_params(params)."""
    S = struct_emb.shape[-1]
    G = gnn_emb.shape[-1]
    assert struct_emb.shape[:-1] == gnn_emb.shape[:-1], "leading dims must match"
    assert prepared["wcat_s"].shape[0] == S
    assert prepared["wcat_g"].shape[0] == G
    O = prepared["gamma"].shape[1]

    lead = struct_emb.shape[:-1]
    s2 = struct_emb.reshape(-1, S)
    g2 = gnn_emb.reshape(-1, G)
    N = s2.shape[0]

    tm = _choose_row_tile(N, S, G, O, jnp.dtype(s2.dtype).itemsize)
    n_pad = pl.cdiv(N, tm) * tm
    if n_pad != N:
        s2 = jnp.pad(s2, ((0, n_pad - N), (0, 0)))
        g2 = jnp.pad(g2, ((0, n_pad - N), (0, 0)))

    kernel = functools.partial(
        _gated_combiner_kernel,
        out_dim=O,
        add_struct=(S == O),
        add_gnn=(G == O),
    )

    resident = lambda shape: pl.BlockSpec(shape, lambda i: (0, 0))

    # VMEM bound: resident weights + double-buffered streamed tiles + headroom.
    itemsize = 4
    resident_bytes = ((S + G) * 2 * O + 4 * O + 2 * O) * itemsize
    streamed_bytes = 2 * tm * (S + G + O) * itemsize
    vmem_limit = min(48 << 20, max(32 << 20, int(1.5 * (resident_bytes + streamed_bytes))))

    out = pl.pallas_call(
        kernel,
        out_shape=jax.ShapeDtypeStruct((n_pad, O), struct_emb.dtype),
        grid=(n_pad // tm,),
        in_specs=[
            pl.BlockSpec((tm, S), lambda i: (i, 0)),   # struct rows (streamed)
            pl.BlockSpec((tm, G), lambda i: (i, 0)),   # gnn rows (streamed)
            resident((S, 2 * O)), resident((1, 2 * O)),
            resident((G, 2 * O)), resident((1, 2 * O)),
            resident((1, O)), resident((1, O)),
        ],
        out_specs=pl.BlockSpec((tm, O), lambda i: (i, 0)),
        compiler_params=pltpu.CompilerParams(
            dimension_semantics=("parallel",),
            vmem_limit_bytes=vmem_limit,
        ),
    )(
        s2, g2,
        prepared["wcat_s"], prepared["bcat_s"],
        prepared["wcat_g"], prepared["bcat_g"],
        prepared["gamma"], prepared["beta"],
    )
    return out[:N].reshape(lead + (O,))


def _reference(struct_emb, gnn_emb, params):
    """Pure-JAX reference matching the PyTorch forward."""
    S = struct_emb.shape[-1]
    G = gnn_emb.shape[-1]
    O = params["ws"].shape[0]
    st = struct_emb @ params["ws"].T + params["bs"]
    gt = gnn_emb @ params["wg"].T + params["bg"]
    gate_in = jnp.concatenate([struct_emb, gnn_emb], axis=-1)
    z = jax.nn.sigmoid(gate_in @ params["wz"].T + params["bz"])
    combined = z * st + (1.0 - z) * gt
    if S == O:
        combined = combined + struct_emb
    if G == O:
        combined = combined + gnn_emb
    mean = jnp.mean(combined, axis=-1, keepdims=True)
    var = jnp.mean((combined - mean) ** 2, axis=-1, keepdims=True)
    normed = (combined - mean) * jax.lax.rsqrt(var + LN_EPS)
    return normed * params["gamma"] + params["beta"]


def _make_params(key, S, G, O):
    ks = jax.random.split(key, 8)
    return {
        "wz": jax.random.normal(ks[0], (O, S + G), dtype=jnp.float32) * 0.1,
        "bz": jax.random.normal(ks[1], (O,), dtype=jnp.float32) * 0.1,
        "ws": jax.random.normal(ks[2], (O, S), dtype=jnp.float32) * 0.1,
        "bs": jax.random.normal(ks[3], (O,), dtype=jnp.float32) * 0.1,
        "wg": jax.random.normal(ks[4], (O, G), dtype=jnp.float32) * 0.1,
        "bg": jax.random.normal(ks[5], (O,), dtype=jnp.float32) * 0.1,
        "gamma": jnp.ones((O,), dtype=jnp.float32),
        "beta": jnp.zeros((O,), dtype=jnp.float32),
    }


def _run_case(key, lead_shape, S, G, O):
    k1, k2, k3 = jax.random.split(key, 3)
    struct_emb = jax.random.normal(k1, lead_shape + (S,), dtype=jnp.float32)
    gnn_emb = jax.random.normal(k2, lead_shape + (G,), dtype=jnp.float32)
    params = _make_params(k3, S, G, O)

    prepared = prepare_params(params)
    fn = jax.jit(lambda s, g: gated_combiner(s, g, prepared))
    out = jax.block_until_ready(fn(struct_emb, gnn_emb))

    ref = _reference(struct_emb, gnn_emb, params)
    assert out.shape == lead_shape + (O,), f"bad shape {out.shape}"
    # Tolerance accounts for MXU default-precision rounding vs the XLA f32
    # reference; genuine logic bugs produce O(1) errors.
    assert jnp.allclose(out, ref, atol=2e-2, rtol=2e-2), (
        f"mismatch vs reference: max abs err {jnp.max(jnp.abs(out - ref))}"
    )


if __name__ == "__main__":
    key = jax.random.PRNGKey(0)
    k1, k2, k3 = jax.random.split(key, 3)

    # Case 1: struct residual on (S == O), gnn residual off (G != O).
    _run_case(k1, lead_shape=(8,), S=32, G=16, O=32)

    # Case 2: gnn residual on (G == O), struct residual off, N not a multiple
    # of 8 to exercise the row-padding path.
    _run_case(k2, lead_shape=(5,), S=16, G=32, O=32)

    # Case 3: batched leading dims (flattened inside the wrapper), both
    # residuals on (S == G == O).
    _run_case(k3, lead_shape=(2, 9), S=32, G=32, O=32)

    print("KERNEL_OK")
</pallas_src>

<mosaic_0001>
module attributes {stable_mosaic.version = 11 : i64} {
  func.func @_gated_combiner_kernel(%arg0: i32, %arg1: memref<8x32xf32, #tpu.memory_space<vmem>>, %arg2: memref<8x16xf32, #tpu.memory_space<vmem>>, %arg3: memref<32x64xf32, #tpu.memory_space<vmem>>, %arg4: memref<1x64xf32, #tpu.memory_space<vmem>>, %arg5: memref<16x64xf32, #tpu.memory_space<vmem>>, %arg6: memref<1x64xf32, #tpu.memory_space<vmem>>, %arg7: memref<1x32xf32, #tpu.memory_space<vmem>>, %arg8: memref<1x32xf32, #tpu.memory_space<vmem>>, %arg9: memref<8x32xf32, #tpu.memory_space<vmem>>) attributes {dimension_semantics = [#tpu.dimension_semantics<parallel>], iteration_bounds = array<i64: 1>, scalar_prefetch = 0 : i64, scratch_operands = 0 : i64, tpu.core_type = #tpu.core_type<tc>, window_params = [{transform_indices = @transform_0, window_bounds = array<i64: 8, 32>}, {transform_indices = @transform_1, window_bounds = array<i64: 8, 16>}, {pipeline_mode = #tpu.pipeline_mode<synchronous>, transform_indices = @transform_2, window_bounds = array<i64: 32, 64>}, {pipeline_mode = #tpu.pipeline_mode<synchronous>, transform_indices = @transform_3, window_bounds = array<i64: 1, 64>}, {pipeline_mode = #tpu.pipeline_mode<synchronous>, transform_indices = @transform_4, window_bounds = array<i64: 16, 64>}, {pipeline_mode = #tpu.pipeline_mode<synchronous>, transform_indices = @transform_5, window_bounds = array<i64: 1, 64>}, {pipeline_mode = #tpu.pipeline_mode<synchronous>, transform_indices = @transform_6, window_bounds = array<i64: 1, 32>}, {pipeline_mode = #tpu.pipeline_mode<synchronous>, transform_indices = @transform_7, window_bounds = array<i64: 1, 32>}, {transform_indices = @transform_8, window_bounds = array<i64: 8, 32>}]} {
    %c0 = arith.constant 0 : index
    %c0_0 = arith.constant 0 : index
    %0 = vector.load %arg1[%c0, %c0_0] : memref<8x32xf32, #tpu.memory_space<vmem>>, vector<8x32xf32>
    %c0_1 = arith.constant 0 : index
    %c0_2 = arith.constant 0 : index
    %1 = vector.load %arg2[%c0_1, %c0_2] : memref<8x16xf32, #tpu.memory_space<vmem>>, vector<8x16xf32>
    %c0_3 = arith.constant 0 : index
    %c0_4 = arith.constant 0 : index
    %2 = vector.load %arg3[%c0_3, %c0_4] : memref<32x64xf32, #tpu.memory_space<vmem>>, vector<32x64xf32>
    %cst = arith.constant dense<0.000000e+00> : vector<8x64xf32>
    %3 = tpu.matmul %0, %2, %cst {dimension_numbers = #tpu.dot_dimension_numbers<[1], [0], [0], [1], [0, 0, 1, 1], [], []>} : vector<8x32xf32>, vector<32x64xf32>, vector<8x64xf32> -> vector<8x64xf32>
    %c0_5 = arith.constant 0 : index
    %c0_6 = arith.constant 0 : index
    %4 = vector.load %arg4[%c0_5, %c0_6] : memref<1x64xf32, #tpu.memory_space<vmem>>, vector<1x64xf32>
    %5 = vector.broadcast %4 : vector<1x64xf32> to vector<8x64xf32>
    %6 = arith.addf %3, %5 : vector<8x64xf32>
    %c0_7 = arith.constant 0 : index
    %c0_8 = arith.constant 0 : index
    %7 = vector.load %arg5[%c0_7, %c0_8] : memref<16x64xf32, #tpu.memory_space<vmem>>, vector<16x64xf32>
    %cst_9 = arith.constant dense<0.000000e+00> : vector<8x64xf32>
    %8 = tpu.matmul %1, %7, %cst_9 {dimension_numbers = #tpu.dot_dimension_numbers<[1], [0], [0], [1], [0, 0, 1, 1], [], []>} : vector<8x16xf32>, vector<16x64xf32>, vector<8x64xf32> -> vector<8x64xf32>
    %c0_10 = arith.constant 0 : index
    %c0_11 = arith.constant 0 : index
    %9 = vector.load %arg6[%c0_10, %c0_11] : memref<1x64xf32, #tpu.memory_space<vmem>>, vector<1x64xf32>
    %10 = vector.broadcast %9 : vector<1x64xf32> to vector<8x64xf32>
    %11 = arith.addf %8, %10 : vector<8x64xf32>
    %12 = vector.extract_strided_slice %6 {offsets = [0, 0], sizes = [8, 32], strides = [1, 1]} : vector<8x64xf32> to vector<8x32xf32>
    %13 = vector.extract_strided_slice %11 {offsets = [0, 0], sizes = [8, 32], strides = [1, 1]} : vector<8x64xf32> to vector<8x32xf32>
    %14 = vector.extract_strided_slice %6 {offsets = [0, 32], sizes = [8, 32], strides = [1, 1]} : vector<8x64xf32> to vector<8x32xf32>
    %15 = vector.extract_strided_slice %11 {offsets = [0, 32], sizes = [8, 32], strides = [1, 1]} : vector<8x64xf32> to vector<8x32xf32>
    %16 = arith.addf %14, %15 : vector<8x32xf32>
    %17 = arith.negf %16 : vector<8x32xf32>
    %18 = math.exp %17 : vector<8x32xf32>
    %cst_12 = arith.constant 1.000000e+00 : f32
    %19 = vector.broadcast %cst_12 : f32 to vector<8x32xf32>
    %20 = arith.addf %19, %18 : vector<8x32xf32>
    %21 = arith.divf %19, %20 : vector<8x32xf32>
    %22 = arith.subf %12, %13 : vector<8x32xf32>
    %23 = arith.mulf %21, %22 : vector<8x32xf32>
    %24 = arith.addf %13, %23 : vector<8x32xf32>
    %25 = arith.addf %24, %0 : vector<8x32xf32>
    %cst_13 = arith.constant dense<0.000000e+00> : vector<8xf32>
    %26 = vector.multi_reduction <add>, %25, %cst_13 [1] : vector<8x32xf32> to vector<8xf32>
    %27 = vector.shape_cast %26 : vector<8xf32> to vector<8x1xf32>
    %cst_14 = arith.constant 3.200000e+01 : f32
    %28 = vector.broadcast %cst_14 : f32 to vector<8x1xf32>
    %29 = arith.divf %27, %28 : vector<8x1xf32>
    %30 = vector.broadcast %29 : vector<8x1xf32> to vector<8x32xf32>
    %31 = arith.subf %25, %30 : vector<8x32xf32>
    %32 = arith.mulf %31, %31 : vector<8x32xf32>
    %cst_15 = arith.constant dense<0.000000e+00> : vector<8xf32>
    %33 = vector.multi_reduction <add>, %32, %cst_15 [1] : vector<8x32xf32> to vector<8xf32>
    %34 = vector.shape_cast %33 : vector<8xf32> to vector<8x1xf32>
    %cst_16 = arith.constant 3.200000e+01 : f32
    %35 = vector.broadcast %cst_16 : f32 to vector<8x1xf32>
    %36 = arith.divf %34, %35 : vector<8x1xf32>
    %cst_17 = arith.constant 9.99999974E-6 : f32
    %37 = vector.broadcast %cst_17 : f32 to vector<8x1xf32>
    %38 = arith.addf %36, %37 : vector<8x1xf32>
    %39 = math.rsqrt %38 : vector<8x1xf32>
    %40 = vector.broadcast %39 : vector<8x1xf32> to vector<8x32xf32>
    %41 = arith.mulf %31, %40 : vector<8x32xf32>
    %c0_18 = arith.constant 0 : index
    %c0_19 = arith.constant 0 : index
    %42 = vector.load %arg7[%c0_18, %c0_19] : memref<1x32xf32, #tpu.memory_space<vmem>>, vector<1x32xf32>
    %43 = vector.broadcast %42 : vector<1x32xf32> to vector<8x32xf32>
    %44 = arith.mulf %41, %43 : vector<8x32xf32>
    %c0_20 = arith.constant 0 : index
    %c0_21 = arith.constant 0 : index
    %45 = vector.load %arg8[%c0_20, %c0_21] : memref<1x32xf32, #tpu.memory_space<vmem>>, vector<1x32xf32>
    %46 = vector.broadcast %45 : vector<1x32xf32> to vector<8x32xf32>
    %47 = arith.addf %44, %46 : vector<8x32xf32>
    %c0_22 = arith.constant 0 : index
    %c0_23 = arith.constant 0 : index
    %48 = vector.load %arg9[%c0_22, %c0_23] : memref<8x32xf32, #tpu.memory_space<vmem>>, vector<8x32xf32>
    tpu.vector_store %arg9[%c0_22, %c0_23], %47 {strides = array<i32>} : memref<8x32xf32, #tpu.memory_space<vmem>>, vector<8x32xf32>,
    return
  }
  func.func @transform_0(%arg0: i32) -> (i32, i32) {
    %c0_i32 = arith.constant 0 : i32
    %c0_i32_0 = arith.constant 0 : i32
    return %arg0, %c0_i32 : i32, i32
  }
  func.func @transform_1(%arg0: i32) -> (i32, i32) {
    %c0_i32 = arith.constant 0 : i32
    %c0_i32_0 = arith.constant 0 : i32
    return %arg0, %c0_i32 : i32, i32
  }
  func.func @transform_2(%arg0: i32) -> (i32, i32) {
    %c0_i32 = arith.constant 0 : i32
    %c0_i32_0 = arith.constant 0 : i32
    %c0_i32_1 = arith.constant 0 : i32
    return %c0_i32, %c0_i32_0 : i32, i32
  }
  func.func @transform_3(%arg0: i32) -> (i32, i32) {
    %c0_i32 = arith.constant 0 : i32
    %c0_i32_0 = arith.constant 0 : i32
    %c0_i32_1 = arith.constant 0 : i32
    return %c0_i32, %c0_i32_0 : i32, i32
  }
  func.func @transform_4(%arg0: i32) -> (i32, i32) {
    %c0_i32 = arith.constant 0 : i32
    %c0_i32_0 = arith.constant 0 : i32
    %c0_i32_1 = arith.constant 0 : i32
    return %c0_i32, %c0_i32_0 : i32, i32
  }
  func.func @transform_5(%arg0: i32) -> (i32, i32) {
    %c0_i32 = arith.constant 0 : i32
    %c0_i32_0 = arith.constant 0 : i32
    %c0_i32_1 = arith.constant 0 : i32
    return %c0_i32, %c0_i32_0 : i32, i32
  }
  func.func @transform_6(%arg0: i32) -> (i32, i32) {
    %c0_i32 = arith.constant 0 : i32
    %c0_i32_0 = arith.constant 0 : i32
    %c0_i32_1 = arith.constant 0 : i32
    return %c0_i32, %c0_i32_0 : i32, i32
  }
  func.func @transform_7(%arg0: i32) -> (i32, i32) {
    %c0_i32 = arith.constant 0 : i32
    %c0_i32_0 = arith.constant 0 : i32
    %c0_i32_1 = arith.constant 0 : i32
    return %c0_i32, %c0_i32_0 : i32, i32
  }
  func.func @transform_8(%arg0: i32) -> (i32, i32) {
    %c0_i32 = arith.constant 0 : i32
    %c0_i32_0 = arith.constant 0 : i32
    return %arg0, %c0_i32 : i32, i32
  }
}

</mosaic_0001>

<bundles_post_ra>
// kernel: _lambda_.1
= control target key start
LH: loop header
LB: loop body
LE: loop exit
PB: predicated region body
PF: predicated region fallthrough
CT: control target
= control target key end

     0   :  { %13 = vsyncpa [#allocation3], 0  ;;  %s545_s0 = inlined_call_operand.hbm [shape: f32[8,32], index: 0, kind: input, shape index: {}]   ;;  %s546_s1 = inlined_call_operand.vmem [shape: f32[8,16], index: 1, kind: input, shape index: {}]   ;;  %s547_s2 = inlined_call_operand.hbm [shape: f32[32,64], index: 2, kind: input, shape index: {}]   ;;  %s548_s3 = inlined_call_operand.vmem [shape: f32[1,64], index: 3, kind: input, shape index: {}]   ;;  %s549_s4 = inlined_call_operand.vmem [shape: f32[16,64], index: 4, kind: input, shape index: {}]   ;;  %s550_s5 = inlined_call_operand.vmem [shape: f32[1,64], index: 5, kind: input, shape index: {}]   ;;  %s551_s6 = inlined_call_operand.vmem [shape: f32[1,32], index: 6, kind: input, shape index: {}]   ;;  %s552_s7 = inlined_call_operand.vmem [shape: f32[1,32], index: 7, kind: input, shape index: {}]   ;;  %s553_s8 = inlined_call_operand.hbm [shape: f32[8,32], index: 8, kind: output, shape index: {}]  }
   0x1   :  { %14 = vsyncpa [#allocation6], 0 }
   0x2   :  { %15 = vsyncpa [#allocation4], 0  ;;  %s422_s27 = smov [#allocation2]   ;;  %s423_s29 = smov [#allocation5]  }
   0x3   :  { %s22_s28 = sshll.u32 %s422_s27, 4  ;;  %s33_s30 = sshll.u32 %s423_s29, 4  ;;  %s23_s28 = int_to_ptr.vmem [resolvable:$true] %s22_s28  ;;  %s477_s30 = int_to_ptr.vmem [resolvable:$true] %s33_s30 }
   0x4   :  { %s350_s11 = scalar_lea.hbm %s545_s0, 128 }
   0x5   :  { %p351_p0 = scmp.ne.s32.totalorder %s545_s0, %s350_s11  ;;  %p354_p1 = scmp.lt.u32.totalorder %s350_s11, %s545_s0 }
   0x7   :  { %p356_p2 = pnand %p354_p1, %p351_p0 }
   0x9   :  { %359 = shalt.err (!%p356_p2)
}
   0xa   :  { %s360_s16 = scalar_lea.vmem %s23_s28, 128  ;;  %p365_p4 = scmp.lt.s32.totalorder %s23_s28, %s23_s28 }
   0xb   :  { %p361_p3 = scmp.ne.s32.totalorder %s23_s28, %s360_s16  ;;  %p366_p5 = scmp.lt.s32.totalorder %s360_s16, %s360_s16 }
   0xd   :  { %p367_p6 = por %p366_p5, %p365_p4 }
   0xf   :  { %p368_p7 = pnand %p367_p6, %p361_p3 }
  0x11   :  { %371 = shalt.err (!%p368_p7)
}
  0x12   :  { %25 = dma.hbm_to_vmem [thread:$0]  %s545_s0, 128, %s23_s28, [#allocation3]  }
  0x13   :  { %s372_s21 = scalar_lea.hbm %s547_s2, 512 }
  0x14   :  { %p373_p8 = scmp.ne.s32.totalorder %s547_s2, %s372_s21  ;;  %p376_p9 = scmp.lt.u32.totalorder %s372_s21, %s547_s2 }
  0x16   :  { %p378_p10 = pnand %p376_p9, %p373_p8 }
  0x18   :  { %381 = shalt.err (!%p378_p10)
}
  0x19   :  { %s382_s26 = scalar_lea.vmem %s477_s30, 512  ;;  %p387_p12 = scmp.lt.s32.totalorder %s477_s30, %s477_s30 }
  0x1a   :  { %p383_p11 = scmp.ne.s32.totalorder %s477_s30, %s382_s26  ;;  %p388_p13 = scmp.lt.s32.totalorder %s382_s26, %s382_s26 }
  0x1c   :  { %p389_p0 = por %p388_p13, %p387_p12 }
  0x1e   :  { %p390_p1 = pnand %p389_p0, %p383_p11 }
  0x20   :  { %393 = shalt.err (!%p390_p1)
}
  0x21   :  { %s424_s0 = smov 128   ;;  %s425_s27 = smov 8  }
  0x22   :  { %39 = dma.hbm_to_vmem [thread:$0]  %s547_s2, 512, %s477_s30, [#allocation6], %s424_s0, %s424_s0, %s425_s27  }
  0x23   :  { %416 = dma.done.wait [#allocation3], 128  }
  0x24   :  { %417 = vsyncadd [#allocation3], 4294967168 }
  0x25   :  { %418 = dma.done.wait [#allocation6], 512  }
  0x26   :  { %419 = vsyncadd [#allocation6], 4294966784  ;;  %v426_v0 = vmov 0.0|0.0   ;;  %vm427_vm0 = vmmov 0   ;;  %v428_v1 = vmov 0.0   ;;  %v58_v2 = vld [vmem:[#allocation5] sm:$0xff] }
  0x27   :  { %325 = vmatprep.subr.bf16.mxu0 %v426_v0  ;;  %331 = vmatprep.subr.bf16.mxu1 %v426_v0  ;;  %v59_v3 = vld [vmem:[#allocation5 + $0x8] sm:$0xff]  ;;  %v143_v4 = vld [vmem:[%s549_s4] sm:$0xff]  ;;  %v144_v6 = vld [vmem:[%s549_s4 + $0x8] sm:$0xff]  ;;  %vm152_vm1 = vcmask 130048   ;;  %vm69_vm2 = vcmask 261120   ;;  %s431_s19 = smov [#allocation7]  }
  0x28   :  { %322 = vmatprep.mubr.msk.f32.mxu1 %vm427_vm0, %v428_v1  ;;  %315 = vmatprep.mubr.msk.f32.mxu0 %vm427_vm0, %v428_v1  ;;  %v326_v5 = vpack.c.bf16 %v59_v3, %v58_v2  ;;  %v60_v7 = vld [vmem:[#allocation5 + $0x10] sm:$0xff]  ;;  %v61_v8 = vld [vmem:[#allocation5 + $0x18] sm:$0xff]  ;;  %v332_v9 = vpack.c.bf16 %v144_v6, %v143_v4  ;;  %s282_s20 = sshll.u32 %s431_s19, 4  ;;  %s283_s20 = int_to_ptr.vmem [resolvable:$true] %s282_s20 }
  0x29   :  { %v329_v10 = vpack.c.bf16 %v61_v8, %v60_v7  ;;  %v57_v11 = vld [vmem:[%s546_s1] sm:$0xff]  ;;  %s429_s1 = smov 32   ;;  %s394_s21 = scalar_lea.vmem %s283_s20, 128 }
  0x2a   :  { %327 = vmatpush3.bf16.msra.mxu0 %v326_v5  ;;  %333 = vmatpush3.bf16.msra.mxu1 %v332_v9  ;;  %v56_v12 = vld [vmem:[#allocation2] sm:$0xff]  ;;  %p395_p2 = scmp.ne.s32.totalorder %s283_s20, %s394_s21  ;;  %p399_p3 = scmp.lt.s32.totalorder %s283_s20, %s283_s20 }
  0x2b   :  { %328 = vmatprep.subr.bf16.mxu0 %v426_v0  ;;  %v294_v13 = vld [vmem:[%s550_s5] ss:$0 sm:$0xff]  ;;  %s430_s5 = smov 96   ;;  %p400_p4 = scmp.lt.s32.totalorder %s394_s21, %s394_s21 }
  0x2c   :  { %v292_v15 = vld [vmem:[%s548_s3] ss:$0 sm:$0xff] }
  0x2d   :  { %323 = vmatmul.mubr.msk.f32.vlgmr.msra.gmra.mrb[0].mxu1 %vm152_vm1, %v57_v11  ;;  %v297_v42 = vld [vmem:[%s551_s6] ss:$0 sm:$0xff]  ;;  %p401_p5 = por %p400_p4, %p399_p3 }
  0x2e   :  { %330 = vmatpush3.bf16.msra.mxu0 %v329_v10  ;;  %v298_v44 = vld [vmem:[%s552_s7] ss:$0 sm:$0xff] }
  0x2f   :  { %p402_p6 = pnand %p401_p5, %p395_p2 }
  0x31   :  { %316 = vmatmul.mubr.msk.f32.vlgmr.msra.gmra.mrb[0].mxu0 %vm69_vm2, %v56_v12 }
 0x100   :  { %v222_v14 = vpop.f32.mrb[0].mxu1 }
 0x101   :  { %v324_v16 = vpop.f32.mrb[1].mxu1  ;;  %v223_v17 = vadd.f32 %v294_v13, %v222_v14 }
 0x104   :  { %v139_v18 = vpop.f32.mrb[0].mxu0 }
 0x105   :  { %v140_v19 = vadd.f32 %v292_v15, %v139_v18  ;;  %v317_v20 = vpop.f32.mrb[1].mxu0 }
 0x107   :  { %v233_v21 = vsub.f32 %v140_v19, %v223_v17  ;;  %v226_v22 = vadd.f32 %v223_v17, %v140_v19 }
 0x109   :  { %235 = vrot.lane.b32.xlu0 %v233_v21, %s429_s1  ;;  %v296_v23 = vmul.f32 -1.442695, %v226_v22 }
 0x10b   :  { %344 = vpow2.f32 %v296_v23 }
 0x115   :  { %v345_v24 = vpop.eup %344 }
 0x116   :  { %v230_v25 = vadd.f32 1.0, %v345_v24 }
 0x118   :  { %346 = vrcp.f32 %v230_v25 }
 0x122   :  { %v347_v26 = vpop.eup %346 }
 0x17b   :  { %v236_v27 = vpop.permute.xlu0 %235 }
 0x17c   :  { %v238_v28 = vmul.f32 %v347_v26, %v236_v27 }
 0x17e   :  { %240 = vrot.lane.b32.xlu0 %v238_v28, %s430_s5 }
 0x1f0   :  { %v241_v29 = vpop.permute.xlu0 %240 }
 0x1f1   :  { %v243_v30 = vadd.f32 %v241_v29, %v223_v17 }
 0x1f3   :  { %v244_v31 = vadd.f32 %v243_v30, %v56_v12 }
 0x1f5   :  { %v245_v32 = vsel %vm69_vm2, %v244_v31, 0.0 }
 0x1f6   :  { %246 = vadd.xlane.f32.xlu1 %v245_v32 }
 0x283   :  { %v247_v33 = vpop.xlane.xlu1 %246 }
 0x284   :  { %v249_v34 = vmul.f32 0.03125, %v247_v33 }
 0x286   :  { %v250_v35 = vsub.f32 %v244_v31, %v249_v34 }
 0x288   :  { %v251_v36 = vmul.f32 %v250_v35, %v250_v35 }
 0x28a   :  { %v252_v37 = vsel %vm69_vm2, %v251_v36, 0.0 }
 0x28b   :  { %253 = vadd.xlane.f32.xlu1 %v252_v37 }
 0x318   :  { %v254_v38 = vpop.xlane.xlu1 %253 }
 0x319   :  { %v255_v39 = vmul.f32 0.03125, %v254_v38 }
 0x31b   :  { %v256_v40 = vadd.f32 1e-05, %v255_v39 }
 0x31d   :  { %348 = vrsqrt.f32 %v256_v40 }
 0x327   :  { %v349_v41 = vpop.eup %348 }
 0x328   :  { %v258_v43 = vmul.f32 %v349_v41, %v250_v35 }
 0x32a   :  { %v266_v45 = vmul.f32 %v297_v42, %v258_v43 }
 0x32c   :  { %v274_v46 = vadd.f32 %v298_v44, %v266_v45 }
 0x32e   :  { %275 = vst.msk [vmem:[#allocation7] sm:$0xff] %vm69_vm2, %v274_v46 }
 0x32f   :  { %405 = shalt.err (!%p402_p6)
}
 0x330   :  { %s406_s23 = scalar_lea.hbm %s553_s8, 128 }
 0x331   :  { %p407_p7 = scmp.ne.s32.totalorder %s553_s8, %s406_s23  ;;  %p410_p8 = scmp.lt.u32.totalorder %s406_s23, %s553_s8 }
 0x333   :  { %p412_p9 = pnand %p410_p8, %p407_p7 }
 0x335   :  { %415 = shalt.err (!%p412_p9)
}
 0x336   :  { %285 = dma.vmem_to_hbm [thread:$0]  %s283_s20, 128, %s553_s8, [#allocation4]  }
 0x337   :  { %420 = dma.done.wait [#allocation4], 128  }
 0x338   :  { %421 = vsyncadd [#allocation4], 4294967168 }
 0x339   :  { %289 = vsyncpa [#allocation3], 1 }
 0x33a   :  { %290 = vsyncpa [#allocation6], 1 }
 0x33b   :  { %291 = vsyncpa [#allocation4], 1 }

</bundles_post_ra>
